<compile_context>
chip_gen: v7x
topology: tpu7x:2x2x1
jax: 0.10.0
libtpu: 0.0.40
codegen_flags: <defaults>
</compile_context>

<pallas_src>
import functools

import jax
import jax.numpy as jnp
from jax.experimental import pallas as pl
from jax.experimental.pallas import tpu as pltpu


def _double_conv_kernel(x_ref, t1_ref, t2_ref, sb1_ref, sb2_ref, o_ref,
                        xpad_ref, hpad_ref, *, H):
    """Fused (conv3x3 + BN + ReLU) x 2 for one batch element.

    x_ref:    (1, H, W*Cin)        input rows, channel-fastest within a row
    t1_ref:   (3, W*Cin,  W*Cmid)  block-Toeplitz row matrices (bf16)
    t2_ref:   (3, W*Cmid, W*Cout)  block-Toeplitz row matrices (bf16)
    sb1_ref:  (2, W*Cmid)          folded BN scale/bias, tiled over W (f32)
    sb2_ref:  (2, W*Cout)
    o_ref:    (1, H, W*Cout)       lane-dense output
    xpad_ref: (H+2, W*Cin)   VMEM  row-halo scratch for layer 1
    hpad_ref: (H+2, W*Cmid)  VMEM  row-halo scratch for the intermediate
    """
    wc_mid = t1_ref.shape[2]
    wc_out = t2_ref.shape[2]

    # ---- layer 1: conv3x3 + BN + ReLU -------------------------------------
    # Row halo in VMEM; the column halo is folded into t1/t2 structure.
    xpad_ref[...] = jnp.zeros_like(xpad_ref)
    xpad_ref[1:H + 1, :] = x_ref[0]

    acc1 = jnp.zeros((H, wc_mid), jnp.float32)
    for dy in range(3):  # static unroll: 3 MXU pushes with K = W*Cin
        acc1 = acc1 + jnp.dot(xpad_ref[dy:dy + H, :].astype(jnp.bfloat16),
                              t1_ref[dy],
                              preferred_element_type=jnp.float32)
    h = jnp.maximum(acc1 * sb1_ref[0:1, :] + sb1_ref[1:2, :], 0.0)

    # ---- layer 2: conv3x3 + BN + ReLU (intermediate stays in VMEM) --------
    hpad_ref[...] = jnp.zeros_like(hpad_ref)
    hpad_ref[1:H + 1, :] = h

    acc2 = jnp.zeros((H, wc_out), jnp.float32)
    for dy in range(3):
        acc2 = acc2 + jnp.dot(hpad_ref[dy:dy + H, :].astype(jnp.bfloat16),
                              t2_ref[dy],
                              preferred_element_type=jnp.float32)
    y = jnp.maximum(acc2 * sb2_ref[0:1, :] + sb2_ref[1:2, :], 0.0)
    o_ref[0] = y.astype(o_ref.dtype)  # full 128-lane, unmasked store


def _fold_bn(conv_bias, gamma, beta, running_mean, running_var, eps=1e-5):
    scale = gamma / jnp.sqrt(running_var + eps)
    bias = (conv_bias - running_mean) * scale + beta
    return scale, bias


def _conv_row_matrices(w_hwio, W):
    """Block-Toeplitz lowering of a 3x3 conv along the W axis.

    Returns T of shape (3, W*Cin, W*Cout) such that for a row band
    A = xpad[dy:dy+H, :] (rows flattened as W*Cin, channel-fastest):
        out2d += A @ T[dy]
    reproduces the conv over (dx, ci). Column (left/right) zero-padding is
    handled by simply omitting out-of-range taps from T.
    """
    kh, kw, cin, cout = w_hwio.shape
    p = jnp.arange(W)[:, None]   # input column index
    j = jnp.arange(W)[None, :]   # output column index
    mats = []
    for dy in range(kh):
        t = jnp.zeros((W * cin, W * cout), jnp.float32)
        for dx in range(kw):
            sel = (p == j + dx - 1).astype(jnp.float32)           # (W, W)
            blk = sel[:, None, :, None] * w_hwio[dy, dx][None, :, None, :]
            t = t + blk.reshape(W * cin, W * cout)
        mats.append(t)
    return jnp.stack(mats, axis=0)


def prepare_double_conv(params, W, eps=1e-5):
    """One-time lowering of PyTorch-layout params to kernel operands (hoisted
    out of the forward path: transposes, BN folding, Toeplitz build, bf16)."""
    w1 = jnp.transpose(params["w1_oihw"], (2, 3, 1, 0))  # OIHW -> HWIO
    w2 = jnp.transpose(params["w2_oihw"], (2, 3, 1, 0))
    s1, b1 = _fold_bn(params["b1"], params["bn1_gamma"], params["bn1_beta"],
                      params["bn1_mean"], params["bn1_var"], eps)
    s2, b2 = _fold_bn(params["b2"], params["bn2_gamma"], params["bn2_beta"],
                      params["bn2_mean"], params["bn2_var"], eps)
    return {
        "t1": _conv_row_matrices(w1, W).astype(jnp.bfloat16),
        "t2": _conv_row_matrices(w2, W).astype(jnp.bfloat16),
        "sb1": jnp.stack([jnp.tile(s1, W), jnp.tile(b1, W)]).astype(jnp.float32),
        "sb2": jnp.stack([jnp.tile(s2, W), jnp.tile(b2, W)]).astype(jnp.float32),
    }


@jax.jit
def double_conv_forward(x_nchw, kparams):
    """Forward pass of DoubleConv. Input/output in NCHW (PyTorch convention)."""
    N, c_in, H, W = x_nchw.shape
    c_mid = kparams["sb1"].shape[1] // W
    c_out = kparams["sb2"].shape[1] // W

    # NCHW -> (N, H, W*Cin) with channels fastest within each row.
    x2d = jnp.transpose(x_nchw, (0, 2, 3, 1)).reshape(N, H, W * c_in)

    out2d = pl.pallas_call(
        functools.partial(_double_conv_kernel, H=H),
        out_shape=jax.ShapeDtypeStruct((N, H, W * c_out), x_nchw.dtype),
        grid=(N,),
        in_specs=[
            pl.BlockSpec((1, H, W * c_in), lambda n: (n, 0, 0)),
            pl.BlockSpec((3, W * c_in, W * c_mid), lambda n: (0, 0, 0)),
            pl.BlockSpec((3, W * c_mid, W * c_out), lambda n: (0, 0, 0)),
            pl.BlockSpec((2, W * c_mid), lambda n: (0, 0)),
            pl.BlockSpec((2, W * c_out), lambda n: (0, 0)),
        ],
        out_specs=pl.BlockSpec((1, H, W * c_out), lambda n: (n, 0, 0)),
        scratch_shapes=[
            pltpu.VMEM((H + 2, W * c_in), jnp.float32),
            pltpu.VMEM((H + 2, W * c_mid), jnp.float32),
        ],
        compiler_params=pltpu.CompilerParams(
            dimension_semantics=("parallel",)),
    )(x2d, kparams["t1"], kparams["t2"], kparams["sb1"], kparams["sb2"])

    # (N, H, W*Cout) -> NCHW
    return jnp.transpose(out2d.reshape(N, H, W, c_out), (0, 3, 1, 2))


def make_double_conv_params(key, in_channels, out_channels):
    """Deterministic synthetic parameters matching DoubleConv.__init__ shapes."""
    ks = jax.random.split(key, 8)
    p = {}
    # Conv weights in PyTorch layout (Cout, Cin, 3, 3).
    p["w1_oihw"] = 0.2 * jax.random.normal(ks[0], (out_channels, in_channels, 3, 3), jnp.float32)
    p["b1"] = 0.1 * jax.random.normal(ks[1], (out_channels,), jnp.float32)
    p["w2_oihw"] = 0.2 * jax.random.normal(ks[2], (out_channels, out_channels, 3, 3), jnp.float32)
    p["b2"] = 0.1 * jax.random.normal(ks[3], (out_channels,), jnp.float32)
    # BatchNorm params / running stats (eval-mode).
    p["bn1_gamma"] = 1.0 + 0.1 * jax.random.normal(ks[4], (out_channels,), jnp.float32)
    p["bn1_beta"] = 0.1 * jax.random.normal(ks[5], (out_channels,), jnp.float32)
    p["bn1_mean"] = 0.05 * jax.random.normal(ks[6], (out_channels,), jnp.float32)
    p["bn1_var"] = jnp.abs(1.0 + 0.1 * jax.random.normal(ks[7], (out_channels,), jnp.float32))
    p["bn2_gamma"] = p["bn1_gamma"] * 0.9
    p["bn2_beta"] = p["bn1_beta"] * -1.0
    p["bn2_mean"] = p["bn1_mean"] * 0.5
    p["bn2_var"] = p["bn1_var"] * 1.1
    return p


def _reference_forward(x_nchw, params):
    """Pure-JAX reference (lax conv, f32) with identical eval-mode BN semantics."""
    def block(x, w_oihw, b, gamma, beta, mean, var):
        y = jax.lax.conv_general_dilated(
            x, w_oihw, window_strides=(1, 1), padding=((1, 1), (1, 1)),
            dimension_numbers=("NCHW", "OIHW", "NCHW"))
        y = y + b[None, :, None, None]
        y = (y - mean[None, :, None, None]) / jnp.sqrt(var[None, :, None, None] + 1e-5)
        y = y * gamma[None, :, None, None] + beta[None, :, None, None]
        return jnp.maximum(y, 0.0)

    h = block(x_nchw, params["w1_oihw"], params["b1"], params["bn1_gamma"],
              params["bn1_beta"], params["bn1_mean"], params["bn1_var"])
    return block(h, params["w2_oihw"], params["b2"], params["bn2_gamma"],
                 params["bn2_beta"], params["bn2_mean"], params["bn2_var"])


if __name__ == "__main__":
    key = jax.random.PRNGKey(0)
    k_x, k_p = jax.random.split(key)

    N, Cin, Cout, H, W = 2, 4, 8, 16, 16
    x = jax.random.normal(k_x, (N, Cin, H, W), jnp.float32)
    params = make_double_conv_params(k_p, Cin, Cout)
    kparams = prepare_double_conv(params, W)

    out = double_conv_forward(x, kparams)
    out = jax.block_until_ready(out)

    ref = _reference_forward(x, params)
    assert out.shape == (N, Cout, H, W), out.shape
    # bf16 MXU operands (f32 accumulation/epilogue) vs f32 reference.
    max_err = float(jnp.max(jnp.abs(out - ref)))
    assert max_err < 1.5e-1, max_err

    print("KERNEL_OK")
</pallas_src>

<mosaic_0001>
module attributes {stable_mosaic.version = 11 : i64} {
  func.func @_double_conv_kernel(%arg0: i32, %arg1: memref<1x16x64xf32, #tpu.memory_space<vmem>>, %arg2: memref<3x64x128xbf16, #tpu.memory_space<vmem>>, %arg3: memref<3x128x128xbf16, #tpu.memory_space<vmem>>, %arg4: memref<2x128xf32, #tpu.memory_space<vmem>>, %arg5: memref<2x128xf32, #tpu.memory_space<vmem>>, %arg6: memref<1x16x128xf32, #tpu.memory_space<vmem>>, %arg7: memref<18x64xf32, #tpu.memory_space<vmem>>, %arg8: memref<18x128xf32, #tpu.memory_space<vmem>>) attributes {dimension_semantics = [#tpu.dimension_semantics<parallel>], iteration_bounds = array<i64: 2>, scalar_prefetch = 0 : i64, scratch_operands = 2 : i64, tpu.core_type = #tpu.core_type<tc>, window_params = [{transform_indices = @transform_0, window_bounds = array<i64: 1, 16, 64>}, {pipeline_mode = #tpu.pipeline_mode<synchronous>, transform_indices = @transform_1, window_bounds = array<i64: 3, 64, 128>}, {pipeline_mode = #tpu.pipeline_mode<synchronous>, transform_indices = @transform_2, window_bounds = array<i64: 3, 128, 128>}, {pipeline_mode = #tpu.pipeline_mode<synchronous>, transform_indices = @transform_3, window_bounds = array<i64: 2, 128>}, {pipeline_mode = #tpu.pipeline_mode<synchronous>, transform_indices = @transform_4, window_bounds = array<i64: 2, 128>}, {transform_indices = @transform_5, window_bounds = array<i64: 1, 16, 128>}]} {
    %cst = arith.constant 0.000000e+00 : f32
    %0 = vector.broadcast %cst : f32 to vector<18x64xf32>
    %c0 = arith.constant 0 : index
    %c0_0 = arith.constant 0 : index
    %1 = vector.load %arg7[%c0, %c0_0] : memref<18x64xf32, #tpu.memory_space<vmem>>, vector<18x64xf32>
    tpu.vector_store %arg7[%c0, %c0_0], %0 {strides = array<i32>} : memref<18x64xf32, #tpu.memory_space<vmem>>, vector<18x64xf32>,
    %c0_1 = arith.constant 0 : index
    %c0_2 = arith.constant 0 : index
    %c0_3 = arith.constant 0 : index
    %2 = vector.load %arg1[%c0_1, %c0_2, %c0_3] : memref<1x16x64xf32, #tpu.memory_space<vmem>>, vector<1x16x64xf32>
    %3 = vector.shape_cast %2 : vector<1x16x64xf32> to vector<16x64xf32>
    %c1 = arith.constant 1 : index
    %c0_4 = arith.constant 0 : index
    %4 = vector.load %arg7[%c1, %c0_4] : memref<18x64xf32, #tpu.memory_space<vmem>>, vector<16x64xf32>
    tpu.vector_store %arg7[%c1, %c0_4], %3 {strides = array<i32>} : memref<18x64xf32, #tpu.memory_space<vmem>>, vector<16x64xf32>,
    %cst_5 = arith.constant 0.000000e+00 : f32
    %5 = vector.broadcast %cst_5 : f32 to vector<16x128xf32>
    %c0_6 = arith.constant 0 : index
    %c0_7 = arith.constant 0 : index
    %6 = vector.load %arg7[%c0_6, %c0_7] : memref<18x64xf32, #tpu.memory_space<vmem>>, vector<16x64xf32>
    %7 = arith.truncf %6 : vector<16x64xf32> to vector<16x64xbf16>
    %c0_8 = arith.constant 0 : index
    %c0_9 = arith.constant 0 : index
    %c0_10 = arith.constant 0 : index
    %8 = vector.load %arg2[%c0_8, %c0_9, %c0_10] : memref<3x64x128xbf16, #tpu.memory_space<vmem>>, vector<1x64x128xbf16>
    %9 = vector.shape_cast %8 : vector<1x64x128xbf16> to vector<64x128xbf16>
    %cst_11 = arith.constant dense<0.000000e+00> : vector<16x128xf32>
    %10 = tpu.matmul %7, %9, %cst_11 {dimension_numbers = #tpu.dot_dimension_numbers<[1], [0], [0], [1], [0, 0, 1, 1], [], []>} : vector<16x64xbf16>, vector<64x128xbf16>, vector<16x128xf32> -> vector<16x128xf32>
    %11 = arith.addf %5, %10 : vector<16x128xf32>
    %c1_12 = arith.constant 1 : index
    %c0_13 = arith.constant 0 : index
    %12 = vector.load %arg7[%c1_12, %c0_13] : memref<18x64xf32, #tpu.memory_space<vmem>>, vector<16x64xf32>
    %13 = arith.truncf %12 : vector<16x64xf32> to vector<16x64xbf16>
    %c1_14 = arith.constant 1 : index
    %c0_15 = arith.constant 0 : index
    %c0_16 = arith.constant 0 : index
    %14 = vector.load %arg2[%c1_14, %c0_15, %c0_16] : memref<3x64x128xbf16, #tpu.memory_space<vmem>>, vector<1x64x128xbf16>
    %15 = vector.shape_cast %14 : vector<1x64x128xbf16> to vector<64x128xbf16>
    %cst_17 = arith.constant dense<0.000000e+00> : vector<16x128xf32>
    %16 = tpu.matmul %13, %15, %cst_17 {dimension_numbers = #tpu.dot_dimension_numbers<[1], [0], [0], [1], [0, 0, 1, 1], [], []>} : vector<16x64xbf16>, vector<64x128xbf16>, vector<16x128xf32> -> vector<16x128xf32>
    %17 = arith.addf %11, %16 : vector<16x128xf32>
    %c2 = arith.constant 2 : index
    %c0_18 = arith.constant 0 : index
    %18 = vector.load %arg7[%c2, %c0_18] : memref<18x64xf32, #tpu.memory_space<vmem>>, vector<16x64xf32>
    %19 = arith.truncf %18 : vector<16x64xf32> to vector<16x64xbf16>
    %c2_19 = arith.constant 2 : index
    %c0_20 = arith.constant 0 : index
    %c0_21 = arith.constant 0 : index
    %20 = vector.load %arg2[%c2_19, %c0_20, %c0_21] : memref<3x64x128xbf16, #tpu.memory_space<vmem>>, vector<1x64x128xbf16>
    %21 = vector.shape_cast %20 : vector<1x64x128xbf16> to vector<64x128xbf16>
    %cst_22 = arith.constant dense<0.000000e+00> : vector<16x128xf32>
    %22 = tpu.matmul %19, %21, %cst_22 {dimension_numbers = #tpu.dot_dimension_numbers<[1], [0], [0], [1], [0, 0, 1, 1], [], []>} : vector<16x64xbf16>, vector<64x128xbf16>, vector<16x128xf32> -> vector<16x128xf32>
    %23 = arith.addf %17, %22 : vector<16x128xf32>
    %c0_23 = arith.constant 0 : index
    %c0_24 = arith.constant 0 : index
    %24 = vector.load %arg4[%c0_23, %c0_24] : memref<2x128xf32, #tpu.memory_space<vmem>>, vector<1x128xf32>
    %25 = vector.broadcast %24 : vector<1x128xf32> to vector<16x128xf32>
    %26 = arith.mulf %23, %25 : vector<16x128xf32>
    %c1_25 = arith.constant 1 : index
    %c0_26 = arith.constant 0 : index
    %27 = vector.load %arg4[%c1_25, %c0_26] : memref<2x128xf32, #tpu.memory_space<vmem>>, vector<1x128xf32>
    %28 = vector.broadcast %27 : vector<1x128xf32> to vector<16x128xf32>
    %29 = arith.addf %26, %28 : vector<16x128xf32>
    %cst_27 = arith.constant 0.000000e+00 : f32
    %30 = vector.broadcast %cst_27 : f32 to vector<16x128xf32>
    %31 = arith.maximumf %29, %30 : vector<16x128xf32>
    %cst_28 = arith.constant 0.000000e+00 : f32
    %32 = vector.broadcast %cst_28 : f32 to vector<18x128xf32>
    %c0_29 = arith.constant 0 : index
    %c0_30 = arith.constant 0 : index
    %33 = vector.load %arg8[%c0_29, %c0_30] : memref<18x128xf32, #tpu.memory_space<vmem>>, vector<18x128xf32>
    tpu.vector_store %arg8[%c0_29, %c0_30], %32 {strides = array<i32>} : memref<18x128xf32, #tpu.memory_space<vmem>>, vector<18x128xf32>,
    %c1_31 = arith.constant 1 : index
    %c0_32 = arith.constant 0 : index
    %34 = vector.load %arg8[%c1_31, %c0_32] : memref<18x128xf32, #tpu.memory_space<vmem>>, vector<16x128xf32>
    tpu.vector_store %arg8[%c1_31, %c0_32], %31 {strides = array<i32>} : memref<18x128xf32, #tpu.memory_space<vmem>>, vector<16x128xf32>,
    %cst_33 = arith.constant 0.000000e+00 : f32
    %35 = vector.broadcast %cst_33 : f32 to vector<16x128xf32>
    %c0_34 = arith.constant 0 : index
    %c0_35 = arith.constant 0 : index
    %36 = vector.load %arg8[%c0_34, %c0_35] : memref<18x128xf32, #tpu.memory_space<vmem>>, vector<16x128xf32>
    %37 = arith.truncf %36 : vector<16x128xf32> to vector<16x128xbf16>
    %c0_36 = arith.constant 0 : index
    %c0_37 = arith.constant 0 : index
    %c0_38 = arith.constant 0 : index
    %38 = vector.load %arg3[%c0_36, %c0_37, %c0_38] : memref<3x128x128xbf16, #tpu.memory_space<vmem>>, vector<1x128x128xbf16>
    %39 = vector.shape_cast %38 : vector<1x128x128xbf16> to vector<128x128xbf16>
    %cst_39 = arith.constant dense<0.000000e+00> : vector<16x128xf32>
    %40 = tpu.matmul %37, %39, %cst_39 {dimension_numbers = #tpu.dot_dimension_numbers<[1], [0], [0], [1], [0, 0, 1, 1], [], []>} : vector<16x128xbf16>, vector<128x128xbf16>, vector<16x128xf32> -> vector<16x128xf32>
    %41 = arith.addf %35, %40 : vector<16x128xf32>
    %c1_40 = arith.constant 1 : index
    %c0_41 = arith.constant 0 : index
    %42 = vector.load %arg8[%c1_40, %c0_41] : memref<18x128xf32, #tpu.memory_space<vmem>>, vector<16x128xf32>
    %43 = arith.truncf %42 : vector<16x128xf32> to vector<16x128xbf16>
    %c1_42 = arith.constant 1 : index
    %c0_43 = arith.constant 0 : index
    %c0_44 = arith.constant 0 : index
    %44 = vector.load %arg3[%c1_42, %c0_43, %c0_44] : memref<3x128x128xbf16, #tpu.memory_space<vmem>>, vector<1x128x128xbf16>
    %45 = vector.shape_cast %44 : vector<1x128x128xbf16> to vector<128x128xbf16>
    %cst_45 = arith.constant dense<0.000000e+00> : vector<16x128xf32>
    %46 = tpu.matmul %43, %45, %cst_45 {dimension_numbers = #tpu.dot_dimension_numbers<[1], [0], [0], [1], [0, 0, 1, 1], [], []>} : vector<16x128xbf16>, vector<128x128xbf16>, vector<16x128xf32> -> vector<16x128xf32>
    %47 = arith.addf %41, %46 : vector<16x128xf32>
    %c2_46 = arith.constant 2 : index
    %c0_47 = arith.constant 0 : index
    %48 = vector.load %arg8[%c2_46, %c0_47] : memref<18x128xf32, #tpu.memory_space<vmem>>, vector<16x128xf32>
    %49 = arith.truncf %48 : vector<16x128xf32> to vector<16x128xbf16>
    %c2_48 = arith.constant 2 : index
    %c0_49 = arith.constant 0 : index
    %c0_50 = arith.constant 0 : index
    %50 = vector.load %arg3[%c2_48, %c0_49, %c0_50] : memref<3x128x128xbf16, #tpu.memory_space<vmem>>, vector<1x128x128xbf16>
    %51 = vector.shape_cast %50 : vector<1x128x128xbf16> to vector<128x128xbf16>
    %cst_51 = arith.constant dense<0.000000e+00> : vector<16x128xf32>
    %52 = tpu.matmul %49, %51, %cst_51 {dimension_numbers = #tpu.dot_dimension_numbers<[1], [0], [0], [1], [0, 0, 1, 1], [], []>} : vector<16x128xbf16>, vector<128x128xbf16>, vector<16x128xf32> -> vector<16x128xf32>
    %53 = arith.addf %47, %52 : vector<16x128xf32>
    %c0_52 = arith.constant 0 : index
    %c0_53 = arith.constant 0 : index
    %54 = vector.load %arg5[%c0_52, %c0_53] : memref<2x128xf32, #tpu.memory_space<vmem>>, vector<1x128xf32>
    %55 = vector.broadcast %54 : vector<1x128xf32> to vector<16x128xf32>
    %56 = arith.mulf %53, %55 : vector<16x128xf32>
    %c1_54 = arith.constant 1 : index
    %c0_55 = arith.constant 0 : index
    %57 = vector.load %arg5[%c1_54, %c0_55] : memref<2x128xf32, #tpu.memory_space<vmem>>, vector<1x128xf32>
    %58 = vector.broadcast %57 : vector<1x128xf32> to vector<16x128xf32>
    %59 = arith.addf %56, %58 : vector<16x128xf32>
    %cst_56 = arith.constant 0.000000e+00 : f32
    %60 = vector.broadcast %cst_56 : f32 to vector<16x128xf32>
    %61 = arith.maximumf %59, %60 : vector<16x128xf32>
    %c0_57 = arith.constant 0 : index
    %c0_58 = arith.constant 0 : index
    %c0_59 = arith.constant 0 : index
    %62 = vector.load %arg6[%c0_57, %c0_58, %c0_59] : memref<1x16x128xf32, #tpu.memory_space<vmem>>, vector<1x16x128xf32>
    %63 = vector.shape_cast %62 : vector<1x16x128xf32> to vector<16x128xf32>
    %64 = vector.shape_cast %61 : vector<16x128xf32> to vector<1x16x128xf32>
    tpu.vector_store %arg6[%c0_57, %c0_58, %c0_59], %64 {strides = array<i32>} : memref<1x16x128xf32, #tpu.memory_space<vmem>>, vector<1x16x128xf32>,
    return
  }
  func.func @transform_0(%arg0: i32) -> (i32, i32, i32) {
    %c0_i32 = arith.constant 0 : i32
    %c0_i32_0 = arith.constant 0 : i32
    %c0_i32_1 = arith.constant 0 : i32
    return %arg0, %c0_i32, %c0_i32_0 : i32, i32, i32
  }
  func.func @transform_1(%arg0: i32) -> (i32, i32, i32) {
    %c0_i32 = arith.constant 0 : i32
    %c0_i32_0 = arith.constant 0 : i32
    %c0_i32_1 = arith.constant 0 : i32
    %c0_i32_2 = arith.constant 0 : i32
    return %c0_i32, %c0_i32_0, %c0_i32_1 : i32, i32, i32
  }
  func.func @transform_2(%arg0: i32) -> (i32, i32, i32) {
    %c0_i32 = arith.constant 0 : i32
    %c0_i32_0 = arith.constant 0 : i32
    %c0_i32_1 = arith.constant 0 : i32
    %c0_i32_2 = arith.constant 0 : i32
    return %c0_i32, %c0_i32_0, %c0_i32_1 : i32, i32, i32
  }
  func.func @transform_3(%arg0: i32) -> (i32, i32) {
    %c0_i32 = arith.constant 0 : i32
    %c0_i32_0 = arith.constant 0 : i32
    %c0_i32_1 = arith.constant 0 : i32
    return %c0_i32, %c0_i32_0 : i32, i32
  }
  func.func @transform_4(%arg0: i32) -> (i32, i32) {
    %c0_i32 = arith.constant 0 : i32
    %c0_i32_0 = arith.constant 0 : i32
    %c0_i32_1 = arith.constant 0 : i32
    return %c0_i32, %c0_i32_0 : i32, i32
  }
  func.func @transform_5(%arg0: i32) -> (i32, i32, i32) {
    %c0_i32 = arith.constant 0 : i32
    %c0_i32_0 = arith.constant 0 : i32
    %c0_i32_1 = arith.constant 0 : i32
    return %arg0, %c0_i32, %c0_i32_0 : i32, i32, i32
  }
}

</mosaic_0001>

<bundles_post_ra>
// kernel: double_conv_forward.1
= control target key start
LH: loop header
LB: loop body
LE: loop exit
PB: predicated region body
PF: predicated region fallthrough
CT: control target
= control target key end

     0   :  { %s1240_s18 = smov 0   ;;  %s1445_s0 = inlined_call_operand.vmem [shape: f32[2,16,64], index: 0, kind: input, shape index: {}]   ;;  %s1446_s1 = inlined_call_operand.vmem [shape: bf16[3,64,128], index: 1, kind: input, shape index: {}]   ;;  %s1447_s2 = inlined_call_operand.vmem [shape: bf16[3,128,128], index: 2, kind: input, shape index: {}]   ;;  %s1448_s3 = inlined_call_operand.vmem [shape: f32[2,128], index: 3, kind: input, shape index: {}]   ;;  %s1449_s4 = inlined_call_operand.vmem [shape: f32[2,128], index: 4, kind: input, shape index: {}]   ;;  %s1450_s5 = inlined_call_operand.vmem [shape: f32[2,16,128], index: 5, kind: output, shape index: {}]  }
   0x1 LB: > { %s898_s19 = sadd.s32 4294967295, %s1206_s18   ;;  %p902_p0 = scmp.ge.s32.totalorder %s1206_s18, 1  ;;  %s1206_s18 = sphi %s1240_s18, %s15_s18  }
   0x2   : > { %p187_p1 = scmp.lt.s32.totalorder %s1206_s18, 3 }
   0x4   : > { %p188_p2 = pnand %p902_p0, %p187_p1 }
   0x5   : > { %v1164_v0 = vld [vmem:[%s1446_s1 + $0x20] sm:$0xff] (!%p188_p2)   ;;  %v1208_v1 = vmov (!%p188_p2), 0.0   ;;  %v1165_v2 = vld [vmem:[%s1446_s1 + $0x28] sm:$0xff] (!%p188_p2)   ;;  %vm1209_vm0 = vmmov (!%p188_p2), 0   ;;  %p215_p3 = scmp.lt.s32.totalorder (!%p188_p2), %s898_s19, 1  ;;  %vm226_vm1 = vcmask (!%p188_p2), 523264  }
   0x6   : > { %191 = sbr.rel (%p188_p2) target bundleno = 544 (0x220), region = 40  ;;  %1044 = vmatprep.subr.bf16.mxu0 (!%p188_p2), %v1208_v1  ;;  %492 = vst [vmem:[#allocation3] sm:$0xff] (!%p188_p2), %v1208_v1  ;;  %493 = vst [vmem:[#allocation3 + $0x8] sm:$0xff] (!%p188_p2), %v1208_v1  ;;  %1100 = vmatprep.subr.bf16.mxu1 (!%p188_p2), %v1208_v1  ;;  %vm229_vm2 = vcmask (!%p188_p2), 517120   ;;  %v1166_v3 = vld [vmem:[%s1446_s1 + $0x30] sm:$0xff] (!%p188_p2)   ;;  %v1167_v6 = vld [vmem:[%s1446_s1 + $0x38] sm:$0xff] (!%p188_p2)  }
   0x7   : > { %494 = vst [vmem:[#allocation3 + $0x10] sm:$0x3] (!%p188_p2), %v1208_v1  ;;  %1045 = vmatpush3.bf16.msra.mxu0 (!%p188_p2), %v1164_v0  ;;  %1052 = vmatprep.mubr.msk.bf16.mxu0 (!%p188_p2), %vm1209_vm0, %v1208_v1  ;;  %227 = vst.msk [vmem:[#allocation2] sm:$0xff] (!%p188_p2), %vm226_vm1, %v1208_v1  ;;  %v1176_v7 = vld [vmem:[%s1447_s2] sm:$0xff] (!%p188_p2)   ;;  %v1178_v8 = vld [vmem:[%s1447_s2 + $0x8] sm:$0xff] (!%p188_p2)  }
   0x8   : > { %1046 = vmatprep.subr.bf16.mxu0 (!%p188_p2), %v1208_v1  ;;  %1116 = vmatprep.mubr.msk.bf16.mxu1 (!%p188_p2), %vm1209_vm0, %v1208_v1  ;;  %228 = vst.msk [vmem:[#allocation2 + $0x8] sm:$0xff] (!%p188_p2), %vm226_vm1, %v1208_v1  ;;  %v1168_v11 = vld [vmem:[%s1446_s1] sm:$0xff] (!%p188_p2)   ;;  %v1180_v13 = vld [vmem:[%s1447_s2 + $0x10] sm:$0xff] (!%p188_p2)   ;;  %v1169_v14 = vld [vmem:[%s1446_s1 + $0x8] sm:$0xff] (!%p188_p2)  }
   0x9   : > { %230 = vst.msk [vmem:[#allocation2 + $0x10] sm:$0x3] (!%p188_p2), %vm229_vm2, %v1208_v1  ;;  %1101 = vmatpush3.bf16.msra.mxu1 (!%p188_p2), %v1176_v7  ;;  %v1182_v15 = vld [vmem:[%s1447_s2 + $0x18] sm:$0xff] (!%p188_p2)   ;;  %v1170_v16 = vld [vmem:[%s1446_s1 + $0x10] sm:$0xff] (!%p188_p2)   ;;  %v1172_v20 = vld [vmem:[%s1446_s1 + $0x40] sm:$0xff] (!%p188_p2)  }
   0xa   : > { %1102 = vmatprep.subr.bf16.mxu1 (!%p188_p2), %v1208_v1  ;;  %v1171_v17 = vld [vmem:[%s1446_s1 + $0x18] sm:$0xff] (!%p188_p2)   ;;  %v1173_v22 = vld [vmem:[%s1446_s1 + $0x48] sm:$0xff] (!%p188_p2)   ;;  %v1174_v23 = vld [vmem:[%s1446_s1 + $0x50] sm:$0xff] (!%p188_p2)  }
   0xb   : > { %1047 = vmatpush3.bf16.msra.mxu0 (!%p188_p2), %v1165_v2  ;;  %v1175_v24 = vld [vmem:[%s1446_s1 + $0x58] sm:$0xff] (!%p188_p2)   ;;  %v1177_v28 = vld [vmem:[%s1447_s2 + $0x40] sm:$0xff] (!%p188_p2)   ;;  %v1179_v29 = vld [vmem:[%s1447_s2 + $0x48] sm:$0xff] (!%p188_p2)  }
   0xc   : > { %1048 = vmatprep.subr.bf16.mxu0 (!%p188_p2), %v1208_v1  ;;  %v1181_v30 = vld [vmem:[%s1447_s2 + $0x50] sm:$0xff] (!%p188_p2)   ;;  %v1183_v31 = vld [vmem:[%s1447_s2 + $0x58] sm:$0xff] (!%p188_p2)   ;;  %v1185_v32 = vld [vmem:[%s1447_s2 + $0x60] sm:$0xff] (!%p188_p2)  }
   0xd   : > { %s1452_s19 = smov (!%p215_p3, %s898_s19), 1  ;;  %1103 = vmatpush3.bf16.msra.mxu1 %v1178_v8  ;;  %v1187_v33 = vld [vmem:[%s1447_s2 + $0x68] sm:$0xff]   ;;  %v1184_v34 = vld [vmem:[%s1447_s2 + $0x20] sm:$0xff]   ;;  %v1189_v35 = vld [vmem:[%s1447_s2 + $0x70] sm:$0xff]  }
   0xe   : > { %s1000_s26 = sshll.u32 %s1452_s19, 4  ;;  %1104 = vmatprep.subr.bf16.mxu1 %v1208_v1  ;;  %v1186_v36 = vld [vmem:[%s1447_s2 + $0x28] sm:$0xff]   ;;  %v1191_v37 = vld [vmem:[%s1447_s2 + $0x78] sm:$0xff]   ;;  %v1188_v38 = vld [vmem:[%s1447_s2 + $0x30] sm:$0xff]  }
   0xf   : > { %s219_s29 = scalar_lea.vmem %s1445_s0, %s1000_s26  ;;  %1049 = vmatpush3.bf16.msra.mxu0 %v1166_v3  ;;  %v1190_v39 = vld [vmem:[%s1447_s2 + $0x38] sm:$0xff]   ;;  %v938_v40 = vld [vmem:[%s1448_s3] ss:$0 sm:$0xff]  ;;  %v939_v42 = vld [vmem:[%s1448_s3 + $0x1] ss:$0 sm:$0xff]  ;;  %s224_s15 = scalar_lea.vmem %s1450_s5, %s1000_s26 }
  0x10   : > { %v231_v4 = vld [vmem:[%s219_s29] sm:$0xff]  ;;  %v232_v5 = vld [vmem:[%s219_s29 + $0x8] sm:$0xff]  ;;  %1050 = vmatprep.subr.bf16.mxu0 %v1208_v1  ;;  %v1194_v58 = vld [vmem:[%s1447_s2 + $0x90] sm:$0xff]  }
  0x11   : > { %233 = vst.msk [vmem:[#allocation2 + $0x1] sm:$0xff] %vm226_vm1, %v231_v4  ;;  %234 = vst.msk [vmem:[#allocation2 + $0x9] sm:$0xff] %vm226_vm1, %v232_v5  ;;  %1105 = vmatpush3.bf16.msra.mxu1 %v1180_v13  ;;  %v1192_v55 = vld [vmem:[%s1447_s2 + $0x80] sm:$0xff]   ;;  %v1193_v57 = vld [vmem:[%s1447_s2 + $0x88] sm:$0xff]  }
  0x12   : > { %1106 = vmatprep.subr.bf16.mxu1 %v1208_v1  ;;  %v1195_v59 = vld [vmem:[%s1447_s2 + $0x98] sm:$0xff]   ;;  %v1196_v60 = vld [vmem:[%s1447_s2 + $0xa0] sm:$0xff]   ;;  %v1197_v61 = vld [vmem:[%s1447_s2 + $0xa8] sm:$0xff]  }
  0x13   : > { %1051 = vmatpush3.bf16.msra.mxu0 %v1167_v6  ;;  %v1198_v62 = vld [vmem:[%s1447_s2 + $0xb0] sm:$0xff]   ;;  %v1199_v63 = vld [vmem:[%s1447_s2 + $0xb8] sm:$0xff]  }
  0x14   : > { %1056 = vmatprep.subr.bf16.mxu0 %v1208_v1 }
  0x15   : > { %1107 = vmatpush3.bf16.msra.mxu1 %v1182_v15 }
  0x16   : > { %1108 = vmatprep.subr.bf16.mxu1 %v1208_v1 }
  0x18   : > { %v246_v9 = vld [vmem:[#allocation2 + $0x1] sm:$0xff]  ;;  %v247_v10 = vld [vmem:[#allocation2 + $0x9] sm:$0xff] }
  0x19   : > { %v248_v12 = vpack.c.bf16 %v247_v10, %v246_v9  ;;  %v235_v18 = vld [vmem:[#allocation2] sm:$0xff]  ;;  %v236_v19 = vld [vmem:[#allocation2 + $0x8] sm:$0xff]  ;;  %1109 = vmatpush3.bf16.msra.mxu1 %v1184_v34 }
  0x1a   : > { %v237_v21 = vpack.c.bf16 %v236_v19, %v235_v18  ;;  %v394_v25 = vld [vmem:[#allocation2 + $0x2] sm:$0xff]  ;;  %v395_v26 = vld [vmem:[#allocation2 + $0xa] sm:$0xff]  ;;  %1110 = vmatprep.subr.bf16.mxu1 %v1208_v1  ;;  %v996_v9 = vld [vmem:[%s1449_s4] ss:$0 sm:$0xff] }
  0x1b   : > { %1053 = vmatmul.mubr.msk.bf16.vlgmr.msra.gmra.mrb[0].mxu0 %vm226_vm1, %v248_v12  ;;  %v396_v27 = vpack.c.bf16 %v395_v26, %v394_v25 }
  0x1c   : > { %1057 = vmatpush3.bf16.msra.mxu0 %v1168_v11  ;;  %1064 = vmatprep.mubr.msk.bf16.mxu0 %vm1209_vm0, %v1208_v1 }
  0x1d   : > { %1058 = vmatprep.subr.bf16.mxu0 %v1208_v1  ;;  %1111 = vmatpush3.bf16.msra.mxu1 %v1186_v36 }
  0x1e   : > { %1112 = vmatprep.subr.bf16.mxu1 %v1208_v1 }
  0x20   : > { %1059 = vmatpush3.bf16.msra.mxu0 %v1169_v14 }
  0x21   : > { %1060 = vmatprep.subr.bf16.mxu0 %v1208_v1  ;;  %1113 = vmatpush3.bf16.msra.mxu1 %v1188_v38 }
  0x22   : > { %1114 = vmatprep.subr.bf16.mxu1 %v1208_v1 }
  0x24   : > { %1061 = vmatpush3.bf16.msra.mxu0 %v1170_v16 }
  0x25   : > { %1062 = vmatprep.subr.bf16.mxu0 %v1208_v1  ;;  %1115 = vmatpush3.bf16.msra.mxu1 %v1190_v39 }
  0x26   : > { %1120 = vmatprep.subr.bf16.mxu1 %v1208_v1 }
  0x28   : > { %1063 = vmatpush3.bf16.msra.mxu0 %v1171_v17 }
  0x29   : > { %1068 = vmatprep.subr.bf16.mxu0 %v1208_v1 }
  0x2b   : > { %1065 = vmatmul.mubr.msk.bf16.vlgmr.msra.gmra.mrb[0].mxu0 %vm226_vm1, %v237_v21 }
  0x2c   : > { %1069 = vmatpush3.bf16.msra.mxu0 %v1172_v20  ;;  %1076 = vmatprep.mubr.msk.bf16.mxu0 %vm1209_vm0, %v1208_v1 }
  0x2d   : > { %1070 = vmatprep.subr.bf16.mxu0 %v1208_v1 }
  0x30   : > { %1071 = vmatpush3.bf16.msra.mxu0 %v1173_v22 }
  0x31   : > { %1072 = vmatprep.subr.bf16.mxu0 %v1208_v1 }
  0x34   : > { %1073 = vmatpush3.bf16.msra.mxu0 %v1174_v23 }
  0x35   : > { %1074 = vmatprep.subr.bf16.mxu0 %v1208_v1 }
  0x38   : > { %1075 = vmatpush3.bf16.msra.mxu0 %v1175_v24 }
  0x39   : > { %1080 = vmatprep.subr.bf16.mxu0 %v1208_v1 }
  0x3b   : > { %1077 = vmatmul.mubr.msk.bf16.vlgmr.msra.gmra.mrb[0].mxu0 %vm226_vm1, %v396_v27 }
  0x3c   : > { %1081 = vmatpush3.bf16.msra.mxu0 %v1177_v28  ;;  %1096 = vmatprep.mubr.msk.bf16.mxu0 %vm1209_vm0, %v1208_v1 }
  0x3d   : > { %1082 = vmatprep.subr.bf16.mxu0 %v1208_v1 }
  0x40   : > { %1083 = vmatpush3.bf16.msra.mxu0 %v1179_v29 }
  0x41   : > { %1084 = vmatprep.subr.bf16.mxu0 %v1208_v1 }
  0x44   : > { %1085 = vmatpush3.bf16.msra.mxu0 %v1181_v30 }
  0x45   : > { %1086 = vmatprep.subr.bf16.mxu0 %v1208_v1 }
  0x48   : > { %1087 = vmatpush3.bf16.msra.mxu0 %v1183_v31 }
  0x49   : > { %1088 = vmatprep.subr.bf16.mxu0 %v1208_v1 }
  0x4c   : > { %1089 = vmatpush3.bf16.msra.mxu0 %v1185_v32 }
  0x4d   : > { %1090 = vmatprep.subr.bf16.mxu0 %v1208_v1 }
  0x50   : > { %1091 = vmatpush3.bf16.msra.mxu0 %v1187_v33 }
  0x51   : > { %1092 = vmatprep.subr.bf16.mxu0 %v1208_v1 }
  0x54   : > { %1093 = vmatpush3.bf16.msra.mxu0 %v1189_v35 }
  0x55   : > { %1094 = vmatprep.subr.bf16.mxu0 %v1208_v1 }
  0x58   : > { %1095 = vmatpush3.bf16.msra.mxu0 %v1191_v37 }
 0x10e   : > { %v467_v41 = vpop.f32.mrb[0].mxu0 }
 0x10f   : > { %v481_v43 = vmul.f32 %v938_v40, %v467_v41  ;;  %v1078_v44 = vpop.f32.mrb[1].mxu0 }
 0x110   : > { %v470_v45 = vpop.f32.mrb[2].mxu0 }
 0x111   : > { %v488_v46 = vadd.f32 %v939_v42, %v481_v43  ;;  %v482_v47 = vmul.f32 %v938_v40, %v470_v45  ;;  %v1079_v48 = vpop.f32.mrb[3].mxu0 }
 0x113   : > { %v490_v49 = vmax.f32 %v488_v46, 0.0  ;;  %v489_v50 = vadd.f32 %v939_v42, %v482_v47 }
 0x115   : > { %495 = vst [vmem:[#allocation3 + $0x1] sm:$0xff] %v490_v49  ;;  %v491_v51 = vmax.f32 %v489_v50, 0.0 }
 0x117   : > { %496 = vst [vmem:[#allocation3 + $0x9] sm:$0xff] %v491_v51  ;;  %v518_v52 = vpack.c.bf16 %v491_v51, %v490_v49 }
 0x119   : > { %1097 = vmatmul.mubr.bf16.vlgmr.msra.gmra.mrb[4].mxu0 %v518_v52 }
 0x11c   : > { %v497_v53 = vld [vmem:[#allocation3] sm:$0xff] }
 0x11e   : > { %v498_v54 = vld [vmem:[#allocation3 + $0x8] sm:$0xff] }
 0x11f   : > { %v499_v56 = vpack.c.bf16 %v498_v54, %v497_v53  ;;  %v714_v0 = vld [vmem:[#allocation3 + $0x2] sm:$0xff]  ;;  %v715_v2 = vld [vmem:[#allocation3 + $0xa] sm:$0xff] }
 0x120   : > { %v716_v3 = vpack.c.bf16 %v715_v2, %v714_v0 }
 0x121   : > { %1117 = vmatmul.mubr.bf16.vlgmr.msra.gmra.mrb[0].mxu1 %v499_v56 }
 0x122   : > { %1121 = vmatpush3.bf16.msra.mxu1 %v1192_v55  ;;  %1136 = vmatprep.mubr.msk.bf16.mxu1 %vm1209_vm0, %v1208_v1 }
 0x123   : > { %1122 = vmatprep.subr.bf16.mxu1 %v1208_v1 }
 0x126   : > { %1123 = vmatpush3.bf16.msra.mxu1 %v1193_v57 }
 0x127   : > { %1124 = vmatprep.subr.bf16.mxu1 %v1208_v1 }
 0x12a   : > { %1125 = vmatpush3.bf16.msra.mxu1 %v1194_v58 }
 0x12b   : > { %1126 = vmatprep.subr.bf16.mxu1 %v1208_v1 }
 0x12e   : > { %1127 = vmatpush3.bf16.msra.mxu1 %v1195_v59 }
 0x12f   : > { %1128 = vmatprep.subr.bf16.mxu1 %v1208_v1 }
 0x132   : > { %1129 = vmatpush3.bf16.msra.mxu1 %v1196_v60 }
 0x133   : > { %1130 = vmatprep.subr.bf16.mxu1 %v1208_v1 }
 0x136   : > { %1131 = vmatpush3.bf16.msra.mxu1 %v1197_v61 }
 0x137   : > { %1132 = vmatprep.subr.bf16.mxu1 %v1208_v1 }
 0x13a   : > { %1133 = vmatpush3.bf16.msra.mxu1 %v1198_v62 }
 0x13b   : > { %1134 = vmatprep.subr.bf16.mxu1 %v1208_v1  ;;  %v997_v1 = vld [vmem:[%s1449_s4 + $0x1] ss:$0 sm:$0xff] }
 0x13e   : > { %1135 = vmatpush3.bf16.msra.mxu1 %v1199_v63 }
 0x141   : > { %1137 = vmatmul.mubr.bf16.vlgmr.msra.gmra.mrb[0].mxu1 %v716_v3 }
 0x1ec   : > { %v618_v4 = vpop.f32.mrb[4].mxu0 }
 0x1ed   : > { %v1098_v5 = vpop.f32.mrb[5].mxu0 }
 0x1ee   : > { %v621_v6 = vpop.f32.mrb[6].mxu0 }
 0x1ef   : > { %v1099_v7 = vpop.f32.mrb[7].mxu0 }
 0x214   : > { %v816_v8 = vpop.f32.mrb[0].mxu1 }
 0x215   : > { %v1140_v10 = vadd.f32 %v816_v8, %v618_v4  ;;  %v1138_v11 = vpop.f32.mrb[1].mxu1 }
 0x216   : > { %v819_v12 = vpop.f32.mrb[2].mxu1 }
 0x217   : > { %v830_v13 = vmul.f32 %v1140_v10, %v996_v9  ;;  %v1141_v14 = vadd.f32 %v819_v12, %v621_v6  ;;  %v1139_v15 = vpop.f32.mrb[3].mxu1 }
 0x219   : > { %v837_v16 = vadd.f32 %v997_v1, %v830_v13  ;;  %v831_v17 = vmul.f32 %v1141_v14, %v996_v9 }
 0x21b   : > { %v839_v18 = vmax.f32 %v837_v16, 0.0  ;;  %v838_v19 = vadd.f32 %v997_v1, %v831_v17 }
 0x21d   : > { %841 = vst [vmem:[%s224_s15] sm:$0xff] %v839_v18  ;;  %v840_v20 = vmax.f32 %v838_v19, 0.0 }
 0x21f   : > { %842 = vst [vmem:[%s224_s15 + $0x8] sm:$0xff] %v840_v20 }
 0x220 PF: > { %s15_s18 = sadd.s32 1, %s1206_s18  }
 0x221   : > { %p12_p4 = scmp.ge.s32.totalorder %s15_s18, 4  }
 0x223   :  { %14 = sbr.rel (!%p12_p4) target bundleno = 1 (0x1), region = 74 }

</bundles_post_ra>
